<compile_context>
chip_gen: v6e
topology: v6e:2x2x1
jax: 0.10.0
libtpu: 0.0.40
codegen_flags: <defaults>
</compile_context>

<pallas_src>
import functools

import jax
import jax.numpy as jnp
from jax.experimental import pallas as pl
from jax.experimental.pallas import tpu as pltpu

_EPS = 1e-5
_MIN_GRID_STEPS = 8                 # enough steps to overlap DMA with compute
_VMEM_BUDGET = 40 * 1024 * 1024     # portable live-VMEM budget (v7x: 64 MiB physical)


def _round_down_8(n):
    return (n // 8) * 8


def _pick_spatial_tile(nS, B, C, itemsize, target_block_bytes):
    """Pick spatial (sublane) tile `st` for a (1, C, st, 128) block."""
    # keep every per-channel DMA chunk >= ~4 KiB
    st_floor = min(nS, max(8, pl.cdiv(4096, 128 * itemsize)))
    cap = target_block_bytes // (C * 128 * itemsize)
    if cap >= nS:
        st = nS                                       # fully contiguous C*HW copy per block
    else:
        st = min(nS, max(st_floor, _round_down_8(cap)))
    # ensure enough grid steps for the software pipeline / both v7x TensorCores
    while st > st_floor and B * pl.cdiv(nS, st) < _MIN_GRID_STEPS:
        nxt = max(st_floor, _round_down_8(st // 2))
        if nxt >= st:
            break
        st = nxt
    return st


# ----------------------------- full-C (single block over channels) -----------------------------

def _ln_fullc_kernel(x_ref, w_ref, b_ref, o_ref, *, inv_c):
    # x_ref: (1, C, st, 128).  Reduction over C = VPU adds across vregs.
    x = x_ref[...].astype(jnp.float32)
    s = jnp.sum(x, axis=1, keepdims=True)
    sq = jnp.sum(x * x, axis=1, keepdims=True)
    mu = s * inv_c
    var = jnp.maximum(sq * inv_c - mu * mu, 0.0)      # single pass; clamp before rsqrt
    inv = jax.lax.rsqrt(var + _EPS)                   # EUP; eps inside sqrt (matches ref)
    w = w_ref[...].astype(jnp.float32)
    b = b_ref[...].astype(jnp.float32)
    o_ref[...] = ((x - mu) * inv * w + b).astype(o_ref.dtype)


def _layernorm_fullc(x4, w4, b4, st):
    B, C, nS, _ = x4.shape
    itemsize = jnp.dtype(x4.dtype).itemsize
    blk = C * st * 128 * itemsize
    # 2x double-buffered in + 2x out + ~2 f32 temporaries + w/b blocks + slack
    need = 4 * blk + 2 * C * st * 128 * 4 + 4 * C * 128 * 4 + (2 << 20)
    vmem_limit = int(min(max(need, 32 << 20), 48 << 20))
    cost = pl.CostEstimate(
        flops=8 * B * C * nS * 128,
        transcendentals=B * nS * 128,
        bytes_accessed=2 * B * C * nS * 128 * itemsize + 2 * C * 128 * 4,
    )
    kern = functools.partial(_ln_fullc_kernel, inv_c=1.0 / C)
    return pl.pallas_call(
        kern,
        out_shape=jax.ShapeDtypeStruct((B, C, nS, 128), x4.dtype),
        grid=(B, pl.cdiv(nS, st)),
        in_specs=[
            pl.BlockSpec((1, C, st, 128), lambda b, j: (b, 0, j, 0)),
            pl.BlockSpec((1, C, 1, 128), lambda b, j: (0, 0, 0, 0)),
            pl.BlockSpec((1, C, 1, 128), lambda b, j: (0, 0, 0, 0)),
        ],
        out_specs=pl.BlockSpec((1, C, st, 128), lambda b, j: (b, 0, j, 0)),
        compiler_params=pltpu.CompilerParams(
            dimension_semantics=("parallel", "parallel"),
            vmem_limit_bytes=vmem_limit,
        ),
        cost_estimate=cost,
    )(x4, w4, b4)


# ----------------------------- large-C: C-chunked two-pass path -----------------------------

def _ln_stats_kernel(x_ref, mu_ref, inv_ref, sum_sc, sq_sc, *, c_total, cb, inv_c):
    k = pl.program_id(2)

    @pl.when(k == 0)
    def _():
        sum_sc[...] = jnp.zeros_like(sum_sc)
        sq_sc[...] = jnp.zeros_like(sq_sc)

    x = x_ref[...].astype(jnp.float32)                # (1, cb, st, 128)
    if c_total % cb != 0:                             # mask the ragged last C chunk
        c_idx = k * cb + jax.lax.broadcasted_iota(jnp.int32, x.shape, 1)
        x = jnp.where(c_idx < c_total, x, 0.0)
    sum_sc[...] += jnp.sum(x, axis=1)                 # (1, st, 128)
    sq_sc[...] += jnp.sum(x * x, axis=1)

    @pl.when(k == pl.num_programs(2) - 1)
    def _():
        mu = sum_sc[...] * inv_c
        var = jnp.maximum(sq_sc[...] * inv_c - mu * mu, 0.0)
        mu_ref[...] = mu
        inv_ref[...] = jax.lax.rsqrt(var + _EPS)


def _ln_apply_kernel(x_ref, mu_ref, inv_ref, w_ref, b_ref, o_ref):
    x = x_ref[...].astype(jnp.float32)                # (1, cb, st, 128)
    mu = mu_ref[...][:, None, :, :]                   # (1, 1, st, 128)
    inv = inv_ref[...][:, None, :, :]
    w = w_ref[...].astype(jnp.float32)                # (1, cb, 1, 128)
    b = b_ref[...].astype(jnp.float32)
    o_ref[...] = ((x - mu) * inv * w + b).astype(o_ref.dtype)


def _layernorm_two_pass(x4, w4, b4, st, cb):
    B, C, nS, _ = x4.shape
    itemsize = jnp.dtype(x4.dtype).itemsize
    n_c = pl.cdiv(C, cb)
    n_s = pl.cdiv(nS, st)

    blk = cb * st * 128 * itemsize
    need = (4 * blk + 2 * cb * st * 128 * 4 + 8 * st * 128 * 4
            + 4 * cb * 128 * 4 + (2 << 20))
    vmem_limit = int(min(max(need, 32 << 20), 48 << 20))

    stats = functools.partial(_ln_stats_kernel, c_total=C, cb=cb, inv_c=1.0 / C)
    mu, inv = pl.pallas_call(
        stats,
        out_shape=(
            jax.ShapeDtypeStruct((B, nS, 128), jnp.float32),
            jax.ShapeDtypeStruct((B, nS, 128), jnp.float32),
        ),
        grid=(B, n_s, n_c),
        in_specs=[pl.BlockSpec((1, cb, st, 128), lambda b, j, k: (b, k, j, 0))],
        out_specs=(
            pl.BlockSpec((1, st, 128), lambda b, j, k: (b, j, 0)),
            pl.BlockSpec((1, st, 128), lambda b, j, k: (b, j, 0)),
        ),
        scratch_shapes=[
            pltpu.VMEM((1, st, 128), jnp.float32),
            pltpu.VMEM((1, st, 128), jnp.float32),
        ],
        compiler_params=pltpu.CompilerParams(
            dimension_semantics=("parallel", "parallel", "arbitrary"),
            vmem_limit_bytes=vmem_limit,
        ),
    )(x4)

    out4 = pl.pallas_call(
        _ln_apply_kernel,
        out_shape=jax.ShapeDtypeStruct((B, C, nS, 128), x4.dtype),
        grid=(B, n_s, n_c),
        in_specs=[
            pl.BlockSpec((1, cb, st, 128), lambda b, j, k: (b, k, j, 0)),
            pl.BlockSpec((1, st, 128), lambda b, j, k: (b, j, 0)),
            pl.BlockSpec((1, st, 128), lambda b, j, k: (b, j, 0)),
            pl.BlockSpec((1, cb, 1, 128), lambda b, j, k: (0, k, 0, 0)),
            pl.BlockSpec((1, cb, 1, 128), lambda b, j, k: (0, k, 0, 0)),
        ],
        out_specs=pl.BlockSpec((1, cb, st, 128), lambda b, j, k: (b, k, j, 0)),
        compiler_params=pltpu.CompilerParams(
            dimension_semantics=("parallel", "parallel", "parallel"),
            vmem_limit_bytes=vmem_limit,
        ),
    )(x4, mu, inv, w4, b4)
    return out4


# ----------------------------- wrapper -----------------------------

def layer_norm_nchw(x, weight, bias, *, target_block_bytes=2 << 20,
                    _force_two_pass=False, _force_c_block=None):
    """LayerNorm over the channel dim of an NCHW tensor (PyTorch LayerNorm module)."""
    B, C, H, W = x.shape
    HW = H * W
    itemsize = jnp.dtype(x.dtype).itemsize
    weight = weight.reshape(-1)
    bias = bias.reshape(-1)

    # Lane-dense layout: (B, C, HW) -> (B, C, nS, 128).  Pad flattened spatial
    # axis when HW % 128 != 0 (per-position normalization: pad is independent
    # and sliced away afterwards).  Exact multiples need no copy at all.
    nS = pl.cdiv(HW, 128)
    HW_pad = nS * 128
    if HW_pad != HW:
        x4 = jnp.pad(x.reshape(B, C, HW), ((0, 0), (0, 0), (0, HW_pad - HW)))
        x4 = x4.reshape(B, C, nS, 128)
    else:
        x4 = x.reshape(B, C, nS, 128)                 # free reshape, no data movement

    w4 = jnp.broadcast_to(weight.reshape(1, C, 1, 1), (1, C, 1, 128))
    b4 = jnp.broadcast_to(bias.reshape(1, C, 1, 1), (1, C, 1, 128))

    # Guard the single-block-C path with a VMEM size check; otherwise C-chunk.
    st_min = min(nS, 8)
    fullc_need = (4 * C * st_min * 128 * itemsize + 2 * C * st_min * 128 * 4
                  + 4 * C * 128 * 4)
    use_two_pass = _force_two_pass or fullc_need > _VMEM_BUDGET

    if use_two_pass:
        st = min(nS, max(8, pl.cdiv(4096, 128 * itemsize)))
        if _force_c_block is not None:
            cb = _force_c_block
        else:
            cb = max(8, _round_down_8(target_block_bytes // (st * 128 * itemsize)))
            cb = min(cb, _round_down_8(C) if C >= 8 else C)
        out4 = _layernorm_two_pass(x4, w4, b4, st, cb)
    else:
        st = _pick_spatial_tile(nS, B, C, itemsize, target_block_bytes)
        out4 = _layernorm_fullc(x4, w4, b4, st)

    out = out4.reshape(B, C, HW_pad)
    if HW_pad != HW:
        out = out[:, :, :HW]
    return out.reshape(B, C, H, W)


def layer_norm_ref(x, weight, bias):
    # pure-JAX reference of the PyTorch forward
    xf = x.astype(jnp.float32)
    x3d = jnp.transpose(xf, (0, 2, 3, 1))             # b h w c
    mu = jnp.mean(x3d, axis=-1, keepdims=True)
    var = jnp.mean((x3d - mu) ** 2, axis=-1, keepdims=True)
    y = (x3d - mu) / jnp.sqrt(var + 1e-5) * weight.reshape(-1) + bias.reshape(-1)
    return jnp.transpose(y, (0, 3, 1, 2)).astype(x.dtype)


if __name__ == "__main__":
    key = jax.random.PRNGKey(0)
    kx, kw, kb, kx2, kw2, kb2 = jax.random.split(key, 6)

    # --- main test: fast full-C path, HW % 128 == 0 ---
    B, C, H, W = 2, 4, 16, 16
    x = jax.random.normal(kx, (B, C, H, W), dtype=jnp.float32)
    weight = jnp.ones((C,), jnp.float32) + 0.1 * jax.random.normal(kw, (C,), jnp.float32)
    bias = jnp.zeros((C,), jnp.float32) + 0.1 * jax.random.normal(kb, (C,), jnp.float32)

    out = jax.block_until_ready(layer_norm_nchw(x, weight, bias))
    ref = layer_norm_ref(x, weight, bias)
    assert out.shape == (B, C, H, W)
    assert jnp.allclose(out, ref, atol=1e-4, rtol=1e-4)

    # --- ragged HW (padded in the wrapper, still lane-dense) ---
    xr = jax.random.normal(kx2, (2, 4, 10, 10), dtype=jnp.float32)
    outr = jax.block_until_ready(layer_norm_nchw(xr, weight, bias))
    refr = layer_norm_ref(xr, weight, bias)
    assert jnp.allclose(outr, refr, atol=1e-4, rtol=1e-4)

    # --- C-chunked two-pass path (forced at a small shape; exercises partial C chunk) ---
    C2 = 20
    x2 = jax.random.normal(kx2, (2, C2, 16, 16), dtype=jnp.float32)
    w2 = jnp.ones((C2,), jnp.float32) + 0.1 * jax.random.normal(kw2, (C2,), jnp.float32)
    b2 = jnp.zeros((C2,), jnp.float32) + 0.1 * jax.random.normal(kb2, (C2,), jnp.float32)
    out2 = jax.block_until_ready(
        layer_norm_nchw(x2, w2, b2, _force_two_pass=True, _force_c_block=8))
    ref2 = layer_norm_ref(x2, w2, b2)
    assert jnp.allclose(out2, ref2, atol=1e-4, rtol=1e-4)

    print("KERNEL_OK")
</pallas_src>

<mosaic_0001>
module attributes {stable_mosaic.version = 11 : i64} {
  func.func @_ln_fullc_kernel(%arg0: i32, %arg1: i32, %arg2: memref<1x4x2x128xf32, #tpu.memory_space<vmem>>, %arg3: memref<1x4x1x128xf32, #tpu.memory_space<vmem>>, %arg4: memref<1x4x1x128xf32, #tpu.memory_space<vmem>>, %arg5: memref<1x4x2x128xf32, #tpu.memory_space<vmem>>) attributes {dimension_semantics = [#tpu.dimension_semantics<parallel>, #tpu.dimension_semantics<parallel>], iteration_bounds = array<i64: 2, 1>, scalar_prefetch = 0 : i64, scratch_operands = 0 : i64, tpu.core_type = #tpu.core_type<tc>, window_params = [{transform_indices = @transform_0, window_bounds = array<i64: 1, 4, 2, 128>}, {pipeline_mode = #tpu.pipeline_mode<synchronous>, transform_indices = @transform_1, window_bounds = array<i64: 1, 4, 1, 128>}, {pipeline_mode = #tpu.pipeline_mode<synchronous>, transform_indices = @transform_2, window_bounds = array<i64: 1, 4, 1, 128>}, {transform_indices = @transform_3, window_bounds = array<i64: 1, 4, 2, 128>}]} {
    %c0 = arith.constant 0 : index
    %c0_0 = arith.constant 0 : index
    %c0_1 = arith.constant 0 : index
    %c0_2 = arith.constant 0 : index
    %0 = vector.load %arg2[%c0, %c0_0, %c0_1, %c0_2] : memref<1x4x2x128xf32, #tpu.memory_space<vmem>>, vector<1x4x2x128xf32>
    %cst = arith.constant dense<0.000000e+00> : vector<1x2x128xf32>
    %1 = vector.multi_reduction <add>, %0, %cst [1] : vector<1x4x2x128xf32> to vector<1x2x128xf32>
    %2 = vector.shape_cast %1 : vector<1x2x128xf32> to vector<1x1x2x128xf32>
    %3 = arith.mulf %0, %0 : vector<1x4x2x128xf32>
    %cst_3 = arith.constant dense<0.000000e+00> : vector<1x2x128xf32>
    %4 = vector.multi_reduction <add>, %3, %cst_3 [1] : vector<1x4x2x128xf32> to vector<1x2x128xf32>
    %5 = vector.shape_cast %4 : vector<1x2x128xf32> to vector<1x1x2x128xf32>
    %cst_4 = arith.constant 2.500000e-01 : f32
    %6 = vector.broadcast %cst_4 : f32 to vector<1x1x2x128xf32>
    %7 = arith.mulf %2, %6 : vector<1x1x2x128xf32>
    %cst_5 = arith.constant 2.500000e-01 : f32
    %8 = vector.broadcast %cst_5 : f32 to vector<1x1x2x128xf32>
    %9 = arith.mulf %5, %8 : vector<1x1x2x128xf32>
    %10 = arith.mulf %7, %7 : vector<1x1x2x128xf32>
    %11 = arith.subf %9, %10 : vector<1x1x2x128xf32>
    %cst_6 = arith.constant 0.000000e+00 : f32
    %12 = vector.broadcast %cst_6 : f32 to vector<1x1x2x128xf32>
    %13 = arith.maximumf %11, %12 : vector<1x1x2x128xf32>
    %cst_7 = arith.constant 9.99999974E-6 : f32
    %14 = vector.broadcast %cst_7 : f32 to vector<1x1x2x128xf32>
    %15 = arith.addf %13, %14 : vector<1x1x2x128xf32>
    %16 = math.rsqrt %15 : vector<1x1x2x128xf32>
    %c0_8 = arith.constant 0 : index
    %c0_9 = arith.constant 0 : index
    %c0_10 = arith.constant 0 : index
    %c0_11 = arith.constant 0 : index
    %17 = vector.load %arg3[%c0_8, %c0_9, %c0_10, %c0_11] : memref<1x4x1x128xf32, #tpu.memory_space<vmem>>, vector<1x4x1x128xf32>
    %c0_12 = arith.constant 0 : index
    %c0_13 = arith.constant 0 : index
    %c0_14 = arith.constant 0 : index
    %c0_15 = arith.constant 0 : index
    %18 = vector.load %arg4[%c0_12, %c0_13, %c0_14, %c0_15] : memref<1x4x1x128xf32, #tpu.memory_space<vmem>>, vector<1x4x1x128xf32>
    %19 = vector.broadcast %7 : vector<1x1x2x128xf32> to vector<1x4x2x128xf32>
    %20 = arith.subf %0, %19 : vector<1x4x2x128xf32>
    %21 = vector.broadcast %16 : vector<1x1x2x128xf32> to vector<1x4x2x128xf32>
    %22 = arith.mulf %20, %21 : vector<1x4x2x128xf32>
    %23 = vector.broadcast %17 : vector<1x4x1x128xf32> to vector<1x4x2x128xf32>
    %24 = arith.mulf %22, %23 : vector<1x4x2x128xf32>
    %25 = vector.broadcast %18 : vector<1x4x1x128xf32> to vector<1x4x2x128xf32>
    %26 = arith.addf %24, %25 : vector<1x4x2x128xf32>
    %c0_16 = arith.constant 0 : index
    %c0_17 = arith.constant 0 : index
    %c0_18 = arith.constant 0 : index
    %c0_19 = arith.constant 0 : index
    %27 = vector.load %arg5[%c0_16, %c0_17, %c0_18, %c0_19] : memref<1x4x2x128xf32, #tpu.memory_space<vmem>>, vector<1x4x2x128xf32>
    tpu.vector_store %arg5[%c0_16, %c0_17, %c0_18, %c0_19], %26 {strides = array<i32>} : memref<1x4x2x128xf32, #tpu.memory_space<vmem>>, vector<1x4x2x128xf32>,
    return
  }
  func.func @transform_0(%arg0: i32, %arg1: i32) -> (i32, i32, i32, i32) {
    %c0_i32 = arith.constant 0 : i32
    %c0_i32_0 = arith.constant 0 : i32
    %c0_i32_1 = arith.constant 0 : i32
    return %arg0, %c0_i32, %arg1, %c0_i32_0 : i32, i32, i32, i32
  }
  func.func @transform_1(%arg0: i32, %arg1: i32) -> (i32, i32, i32, i32) {
    %c0_i32 = arith.constant 0 : i32
    %c0_i32_0 = arith.constant 0 : i32
    %c0_i32_1 = arith.constant 0 : i32
    %c0_i32_2 = arith.constant 0 : i32
    %c0_i32_3 = arith.constant 0 : i32
    return %c0_i32, %c0_i32_0, %c0_i32_1, %c0_i32_2 : i32, i32, i32, i32
  }
  func.func @transform_2(%arg0: i32, %arg1: i32) -> (i32, i32, i32, i32) {
    %c0_i32 = arith.constant 0 : i32
    %c0_i32_0 = arith.constant 0 : i32
    %c0_i32_1 = arith.constant 0 : i32
    %c0_i32_2 = arith.constant 0 : i32
    %c0_i32_3 = arith.constant 0 : i32
    return %c0_i32, %c0_i32_0, %c0_i32_1, %c0_i32_2 : i32, i32, i32, i32
  }
  func.func @transform_3(%arg0: i32, %arg1: i32) -> (i32, i32, i32, i32) {
    %c0_i32 = arith.constant 0 : i32
    %c0_i32_0 = arith.constant 0 : i32
    %c0_i32_1 = arith.constant 0 : i32
    return %arg0, %c0_i32, %arg1, %c0_i32_0 : i32, i32, i32, i32
  }
}

</mosaic_0001>

<bundles_post_ra>
// kernel: tpu_custom_call.1
= control target key start
LH: loop header
LB: loop body
LE: loop exit
PB: predicated region body
PF: predicated region fallthrough
CT: control target
= control target key end

     0   :  { %8 = vsyncpa [#allocation3], 0  ;;  %s976_s0 = inlined_call_operand.hbm [shape: f32[2,4,2,128], index: 0, kind: input, shape index: {}]   ;;  %s977_s1 = inlined_call_operand.hbm [shape: f32[1,4,1,128], index: 1, kind: input, shape index: {}]   ;;  %s978_s2 = inlined_call_operand.hbm [shape: f32[1,4,1,128], index: 2, kind: input, shape index: {}]   ;;  %s979_s3 = inlined_call_operand.hbm [shape: f32[2,4,2,128], index: 3, kind: output, shape index: {}]  }
   0x1   :  { %10 = vsyncpa [#allocation3 + $0x1], 0 }
   0x2   :  { %11 = vsyncpa [#allocation6], 0 }
   0x3   :  { %12 = vsyncpa [#allocation4], 0 }
   0x4   :  { %14 = vsyncpa [#allocation4 + $0x1], 0  ;;  %s776_s12 = smov 0   ;;  %s778_s13 = smov 0  }
   0x5   :  { %s780_s14 = smov 0   ;;  %s782_s15 = smov 0  }
   0x6   :  { %s784_s16 = smov 0   ;;  %s786_s17 = smov 0  }
   0x7 LB: > { %s460_s18 = sadd.s32 4294967295, %s744_s17   ;;  %s461_s19 = sadd.s32 4294967294, %s744_s17   ;;  %s744_s17 = sphi %s786_s17, %s20_s17   ;;  %s740_s16 = sphi %s784_s16, %s999_s16   ;;  %s736_s15 = sphi %s782_s15, %s998_s15   ;;  %s732_s14 = sphi %s780_s14, %s997_s14   ;;  %s728_s13 = sphi %s778_s13, %s996_s13   ;;  %s724_s12 = sphi %s776_s12, %s995_s12  }
   0x8   : > { %p54_p0 = scmp.ne.s32.totalorder %s728_s13, %s724_s12  ;;  %p810_p1 = scmp.eq.s32.totalorder %s460_s18, 0 }
   0x9   : > { %p814_p2 = scmp.eq.s32.totalorder %s460_s18, 1  ;;  %p128_p3 = scmp.eq.s32.totalorder %s461_s19, 1 }
   0xa   : > { %s983_s20 = scalar_select %p810_p1, 1, 0 }
   0xb   : > { %p820_p4 = por %p810_p1, %p54_p0  ;;  %p462_p5 = scmp.ge.s32.totalorder %s744_s17, 1 }
   0xc   : > { %p825_p6 = por %p128_p3, %p54_p0  ;;  %p135_p7 = scmp.lt.s32.totalorder %s744_s17, 3 }
   0xd   : > { %s985_s22 = scalar_select %p820_p4, 1, 0 }
   0xe   : > { %s986_s23 = scalar_select %p825_p6, 1, 0 }
   0xf   : > { %p830_p8 = pnand %p462_p5, %p135_p7  ;;  %s746_s25 = smov [#allocation5]  }
  0x10   : > { %s147_s26 = sshll.u32 %s746_s25, 4  ;;  %s747_s28 = smov [#allocation7]   ;;  %s148_s26 = int_to_ptr.vmem [resolvable:$true] %s147_s26 }
  0x11   : > { %p501_p9 = pneg %p830_p8  ;;  %s160_s29 = sshll.u32 %s747_s28, 4  ;;  %s161_s29 = int_to_ptr.vmem [resolvable:$true] %s160_s29 }
  0x12   : > { %s591_s30 = scalar_lea.vmem %s148_s26, 64  ;;  %p599_p5 = scmp.lt.s32.totalorder %s148_s26, %s148_s26 }
  0x13   : > { %p839_p11 = pnand %p501_p9, %p810_p1  ;;  %p592_p13 = scmp.ne.s32.totalorder %s148_s26, %s591_s30 }
  0x14   : > { %p600_p7 = scmp.lt.s32.totalorder %s591_s30, %s591_s30 }
  0x15   : > { %p582_p12 = pneg %p839_p11 }
  0x16   : > { %p601_p10 = por %p600_p7, %p599_p5 }
  0x17   : > { %p594_p0 = pnand %p592_p13, %p582_p12 }
  0x19   : > { %p595_p3 = pneg %p594_p0 }
  0x1b   : > { %p602_p9 = pnand %p601_p10, %p595_p3 }
  0x1d   : > { %605 = shalt.err (!%p602_p9)
}
  0x1e   : > { %s748_s4 = smov 16   ;;  %s749_s5 = smov 1  }
  0x1f   : > { %504 = dma.hbm_to_vmem [thread:$0]  (!%p839_p11), %s977_s1, 64, %s148_s26, [#allocation6], %s748_s4, %s748_s4, %s749_s5  }
  0x20   : > { %s617_s8 = scalar_lea.vmem %s161_s29, 64  ;;  %p625_p1 = scmp.lt.s32.totalorder %s161_s29, %s161_s29 }
  0x21   : > { %p618_p6 = scmp.ne.s32.totalorder %s161_s29, %s617_s8  ;;  %p626_p4 = scmp.lt.s32.totalorder %s617_s8, %s617_s8 }
  0x23   : > { %p620_p13 = pnand %p618_p6, %p582_p12  ;;  %p627_p5 = por %p626_p4, %p625_p1 }
  0x25   : > { %p621_p0 = pneg %p620_p13 }
  0x27   : > { %p628_p10 = pnand %p627_p5, %p621_p0 }
  0x29   : > { %631 = shalt.err (!%p628_p10)
}
  0x2a   : > { %507 = dma.hbm_to_vmem [thread:$0]  (!%p839_p11), %s978_s2, 64, %s161_s29, [#allocation6], %s748_s4, %s748_s4, %s749_s5  }
  0x2b   : > { %s32_s11 = sadd.s32 1, %s740_s16  ;;  %s41_s18 = sadd.s32 1, %s732_s14 }
  0x2c   : > { %p34_p1 = scmp.ge.s32.totalorder %s32_s11, 2  ;;  %p48_p4 = scmp.ne.s32.totalorder %s732_s14, %s728_s13 }
  0x2d   : > { %p49_p6 = scmp.eq.s32.totalorder %s744_s17, 0  ;;  %p518_p12 = scmp.lt.s32.totalorder %s744_s17, 2 }
  0x2e   : > { %s1001_s11 = smov (%p34_p1, %s32_s11), 0  ;;  %p871_p7 = por %p814_p2, %p48_p4 }
  0x2f   : > { %p50_p3 = por %p49_p6, %p48_p4  ;;  %s36_s25 = ssub.s32 %s740_s16, %s1001_s11 }
  0x30   : > { %s174_s26 = sand.u32 1, %s732_s14   ;;  %p39_p9 = scmp.eq.s32.totalorder %s36_s25, 0 }
  0x31   : > { %s466_s27 = sshll.u32 %s174_s26, 3  ;;  %s487_s28 = sshll.u32 %s740_s16, 7 }
  0x32   : > { %s880_s29 = scalar_select %p39_p9, %s732_s14, %s41_s18  }
  0x33   : > { %s185_s5 = scalar_lea.hbm %s976_s0, %s487_s28  ;;  %s178_s6 = scalar_lea.vmem [#allocation2], %s466_s27 }
  0x34   : > { %s186_s7 = sshll.u32 %s178_s6, 4  ;;  %p887_p11 = pnand %p518_p12, %p50_p3  ;;  %s187_s7 = int_to_ptr.vmem [resolvable:$true] %s186_s7 }
  0x35   : > { %s175_s8 = scalar_lea.sflag [#allocation3], %s174_s26  ;;  %s645_s9 = scalar_lea.vmem %s187_s7, 128 }
  0x36   : > { %p634_p2 = pneg %p887_p11  ;;  %p646_p13 = scmp.ne.s32.totalorder %s187_s7, %s645_s9 }
  0x37   : > { %s750_s10 = smov [#allocation2]  }
  0x38   : > { %p648_p0 = pnand %p646_p13, %p634_p2  ;;  %s650_s18 = sshll.u32 %s750_s10, 4  ;;  %s651_s18 = int_to_ptr.vmem [resolvable:$false] %s650_s18 }
  0x39   : > { %s652_s25 = scalar_lea.vmem %s651_s18, 256  ;;  %p653_p10 = scmp.lt.s32.totalorder %s187_s7, %s651_s18 }
  0x3a   : > { %p649_p5 = pneg %p648_p0  ;;  %p654_p1 = scmp.lt.s32.totalorder %s652_s25, %s645_s9 }
  0x3c   : > { %p655_p4 = por %p654_p1, %p653_p10 }
  0x3e   : > { %p656_p6 = pnand %p655_p4, %p649_p5 }
  0x40   : > { %659 = shalt.err (!%p656_p6)
}
  0x41   : > { %s751_s27 = smov 32   ;;  %s752_s28 = smov 2  }
  0x42   : > { %511 = dma.hbm_to_vmem [thread:$0]  (!%p887_p11), %s185_s5, 128, %s187_s7, %s175_s8, %s751_s27, %s751_s27, %s752_s28  }
  0x43   : > { %198 = sbr.rel (%p830_p8) target bundleno = 130 (0x82), region = 32  ;;  %s898_s26 = sand.u32 (!%p830_p8), 1, %s728_s13  }
  0x44   : > { %s470_s30 = sshll.u32 (!%p830_p8), %s898_s26, 3  ;;  %s201_s4 = scalar_lea.sflag (!%p830_p8), [#allocation3], %s898_s26 }
  0x45   : > { %s204_s6 = scalar_lea.vmem (!%p830_p8), [#allocation2], %s470_s30  ;;  %p991_p12 = scmp.ne.s32.totalorder (!%p830_p8), %s985_s22, 0 }
  0x48   : > { %711 = dma.done.wait (%p991_p12), %s201_s4, 128  }
  0x49   : > { %713 = vsyncadd (%p991_p12), %s201_s4, 4294967168  ;;  %p992_p3 = scmp.ne.s32.totalorder %s983_s20, 0 }
  0x4b   : > { %715 = dma.done.wait (%p992_p3), [#allocation6], 128  }
  0x4c   : > { %717 = vsyncadd (%p992_p3), [#allocation6], 4294967168  ;;  %vm239_vm0 = vcmask 1041408   ;;  %v235_v0 = vld [vmem:[%s204_s6] sm:$0x3]  ;;  %s234_s20 = scalar_lea.vmem [#allocation8], %s470_s30 }
  0x4d   : > { %v236_v1 = vld [vmem:[%s204_s6 + $0x2] sm:$0x3]  ;;  %v237_v2 = vld [vmem:[%s204_s6 + $0x4] sm:$0x3]  ;;  %v238_v3 = vld [vmem:[%s204_s6 + $0x6] sm:$0x3]  ;;  %v247_v7 = vmul.f32 %v235_v0, %v235_v0 }
  0x4e   : > { %v240_v4 = vsel %vm239_vm0, %v235_v0, 0.0  ;;  %v241_v5 = vsel %vm239_vm0, %v236_v1, 0.0  ;;  %v243_v6 = vsel %vm239_vm0, %v237_v2, 0.0  ;;  %v248_v9 = vmul.f32 %v236_v1, %v236_v1  ;;  %v474_v32 = vld [vmem:[#allocation5] ss:$0 sm:$0xff]  ;;  %s356_s22 = sshll.u32 %s234_s20, 4  ;;  %s923_s22 = int_to_ptr.vmem [resolvable:$true] %s356_s22 }
  0x4f   : > { %v242_v8 = vadd.f32 %v241_v5, %v240_v4  ;;  %v249_v10 = vmul.f32 %v237_v2, %v237_v2  ;;  %v245_v11 = vsel %vm239_vm0, %v238_v3, 0.0  ;;  %v250_v12 = vmul.f32 %v238_v3, %v238_v3  ;;  %v475_v34 = vld [vmem:[#allocation5 + $0x1] ss:$0 sm:$0xff]  ;;  %v476_v35 = vld [vmem:[#allocation5 + $0x2] ss:$0 sm:$0xff]  ;;  %s488_s24 = sshll.u32 %s736_s15, 7 }
  0x50   : > { %v251_v13 = vsel %vm239_vm0, %v247_v7, 0.0  ;;  %v252_v15 = vsel %vm239_vm0, %v248_v9, 0.0  ;;  %v477_v36 = vld [vmem:[#allocation5 + $0x3] ss:$0 sm:$0xff]  ;;  %v478_v37 = vld [vmem:[#allocation7] ss:$0 sm:$0xff]  ;;  %s928_s21 = scalar_lea.hbm %s979_s3, %s488_s24 }
  0x51   : > { %v244_v14 = vadd.f32 %v243_v6, %v242_v8  ;;  %v254_v16 = vsel %vm239_vm0, %v249_v10, 0.0  ;;  %v253_v17 = vadd.f32 %v252_v15, %v251_v13  ;;  %v256_v19 = vsel %vm239_vm0, %v250_v12, 0.0  ;;  %v479_v42 = vld [vmem:[#allocation7 + $0x1] ss:$0 sm:$0xff]  ;;  %v480_v43 = vld [vmem:[#allocation7 + $0x2] ss:$0 sm:$0xff] }
  0x52   : > { %v481_v44 = vld [vmem:[#allocation7 + $0x3] ss:$0 sm:$0xff]  ;;  %s342_s15 = scalar_lea.sflag [#allocation4], %s898_s26  ;;  %s660_s8 = scalar_lea.vmem %s923_s22, 128 }
  0x53   : > { %v246_v18 = vadd.f32 %v245_v11, %v244_v14  ;;  %v255_v20 = vadd.f32 %v254_v16, %v253_v17  ;;  %p661_p8 = scmp.ne.s32.totalorder %s923_s22, %s660_s8  ;;  %s753_s9 = smov [#allocation8]  }
  0x54   : > { %s664_s10 = sshll.u32 %s753_s9, 4  ;;  %s665_s10 = int_to_ptr.vmem [resolvable:$false] %s664_s10 }
  0x55   : > { %v258_v21 = vmul.f32 0.25, %v246_v18  ;;  %v257_v22 = vadd.f32 %v256_v19, %v255_v20  ;;  %p662_p9 = pnand %p661_p8, %p871_p7  ;;  %s666_s18 = scalar_lea.vmem %s665_s10, 256 }
  0x56   : > { %p667_p2 = scmp.lt.s32.totalorder %s923_s22, %s665_s10  ;;  %p668_p13 = scmp.lt.s32.totalorder %s666_s18, %s660_s8 }
  0x57   : > { %v260_v23 = vmul.f32 %v258_v21, %v258_v21  ;;  %v259_v24 = vmul.f32 0.25, %v257_v22  ;;  %v273_v28 = vsub.f32 %v235_v0, %v258_v21  ;;  %v274_v29 = vsub.f32 %v236_v1, %v258_v21  ;;  %p663_p11 = pneg %p662_p9 }
  0x58   : > { %v275_v30 = vsub.f32 %v237_v2, %v258_v21  ;;  %v276_v31 = vsub.f32 %v238_v3, %v258_v21  ;;  %p669_p0 = por %p668_p13, %p667_p2 }
  0x59   : > { %v261_v25 = vsub.f32 %v259_v24, %v260_v23 }
  0x5a   : > { %p670_p5 = pnand %p669_p0, %p663_p11 }
  0x5b   : > { %v262_v26 = vmax.f32 %v261_v25, 0.0 }
  0x5d   : > { %v263_v27 = vadd.f32 1e-05, %v262_v26 }
  0x5f   : > { %578 = vrsqrt.f32 %v263_v27 }
  0x6c   : > { %v579_v33 = vpop.eup %578 }
  0x6d   : > { %v277_v38 = vmul.f32 %v579_v33, %v273_v28  ;;  %v278_v39 = vmul.f32 %v579_v33, %v274_v29  ;;  %v279_v40 = vmul.f32 %v579_v33, %v275_v30  ;;  %v280_v41 = vmul.f32 %v579_v33, %v276_v31 }
  0x6f   : > { %v305_v45 = vmul.f32 %v474_v32, %v277_v38  ;;  %v306_v46 = vmul.f32 %v475_v34, %v278_v39  ;;  %v307_v47 = vmul.f32 %v476_v35, %v279_v40  ;;  %v308_v48 = vmul.f32 %v477_v36, %v280_v41 }
  0x71   : > { %v333_v49 = vadd.f32 %v478_v37, %v305_v45  ;;  %v334_v50 = vadd.f32 %v479_v42, %v306_v46  ;;  %v335_v51 = vadd.f32 %v480_v43, %v307_v47  ;;  %v336_v52 = vadd.f32 %v481_v44, %v308_v48 }
  0x73   : > { %337 = vst [vmem:[%s234_s20] sm:$0x3] %v333_v49  ;;  %338 = vst [vmem:[%s234_s20 + $0x2] sm:$0x3] %v334_v50 }
  0x74   : > { %339 = vst [vmem:[%s234_s20 + $0x4] sm:$0x3] %v335_v51  ;;  %340 = vst [vmem:[%s234_s20 + $0x6] sm:$0x3] %v336_v52 }
  0x75   : > { %673 = shalt.err (!%p670_p5)
}
  0x76   : > { %s674_s25 = scalar_lea.hbm %s928_s21, 128  ;;  %s678_s30 = scalar_lea.hbm %s979_s3, 256 }
  0x77   : > { %p675_p10 = scmp.ne.s32.totalorder %s928_s21, %s674_s25  ;;  %p679_p6 = scmp.lt.s32.totalorder %s928_s21, %s979_s3 }
  0x78   : > { %p680_p12 = scmp.lt.s32.totalorder %s678_s30, %s674_s25 }
  0x79   : > { %p676_p1 = pnand %p675_p10, %p871_p7 }
  0x7a   : > { %p681_p3 = por %p680_p12, %p679_p6 }
  0x7b   : > { %p677_p4 = pneg %p676_p1 }
  0x7d   : > { %p682_p8 = pnand %p681_p3, %p677_p4 }
  0x7f   : > { %685 = shalt.err (!%p682_p8)
}
  0x80   : > { %s754_s20 = smov 32   ;;  %s755_s24 = smov 2  }
  0x81   : > { %499 = dma.vmem_to_hbm [thread:$0]  (%p871_p7), %s923_s22, 128, %s928_s21, %s342_s15, %s754_s20, %s754_s20, %s755_s24  }
  0x82 PF: > { %s371_s5 = sand.u32 1, %s724_s12   ;;  %p993_p9 = scmp.ne.s32.totalorder %s986_s23, 0 }
  0x83   : > { %p994_p11 = scmp.ge.s32.totalorder %s744_s17, 2  ;;  %s372_s7 = scalar_lea.sflag [#allocation4], %s371_s5 }
  0x85   : > { %p513_p2 = pnand %p994_p11, %p993_p9 }
  0x87   : > { %p514_p13 = pneg %p513_p2 }
  0x89   : > { %719 = dma.done.wait (%p514_p13), %s372_s7, 128  }
  0x8a   : > { %721 = vsyncadd (%p514_p13), %s372_s7, 4294967168  ;;  %s20_s17 = sadd.s32 1, %s744_s17   ;;  %s995_s12 = smov %s728_s13 }
  0x8b   : > { %p17_p0 = scmp.ge.s32.totalorder %s20_s17, 4   ;;  %s996_s13 = smov %s732_s14 }
  0x8c   : > { %s997_s14 = smov %s880_s29  ;;  %s998_s15 = smov %s740_s16 }
  0x8d   : > { %s999_s16 = smov %s1001_s11  ;;  %19 = sbr.rel (!%p17_p0) target bundleno = 7 (0x7), region = 85 }
  0x92   :  { %377 = vsyncpa [#allocation3], 1 }
  0x93   :  { %379 = vsyncpa [#allocation3 + $0x1], 1 }
  0x94   :  { %380 = vsyncpa [#allocation6], 1 }
  0x95   :  { %381 = vsyncpa [#allocation4], 1 }
  0x96   :  { %383 = vsyncpa [#allocation4 + $0x1], 1 }

</bundles_post_ra>
